<compile_context>
chip_gen: v7x
topology: tpu7x:2x2x1
jax: 0.10.0
libtpu: 0.0.40
codegen_flags: <defaults>
</compile_context>

<pallas_src>
import jax
import jax.numpy as jnp
from jax.experimental import pallas as pl
from jax.experimental.pallas import tpu as pltpu

_LANE = 128


def _round_up(x, m):
    return (x + m - 1) // m * m


def _vmem_capacity_bytes():
    try:
        return int(pltpu.get_tpu_info().vmem_capacity_bytes)
    except Exception:
        return 64 * 1024 * 1024  # assume the smallest per-TC VMEM (v7x)


# ------------------------ fused value-MLP (+ loss) kernel ------------------------

def _fused_value_kernel(x_ref, r_ref, w1_ref, b1_ref, w2_ref, b2_ref, out_ref):
    # x_ref  : (TILE_N, H_pad) bf16   token-major activations (pipelined stream)
    # r_ref  : (TILE_N, 1)     f32    discounted rewards (fused loss input)
    # w1_ref : (H_pad, H_pad)  bf16   first-layer weight [in, out] (resident, 1 buffer)
    # b1_ref : (1, H_pad)      f32    first-layer bias (resident)
    # w2_ref : (1, H_pad)      f32    second-layer weight as a row (resident)
    # b2_ref : (1,)            f32    second-layer bias scalar in SMEM
    # out_ref: (TILE_N, 2)     f32    col 0 = baseline value, col 1 = value * reward
    h = jnp.dot(x_ref[...], w1_ref[...], preferred_element_type=jnp.float32)
    h = jnp.maximum(h + b1_ref[...], 0.0)                      # (TILE_N, H_pad) f32
    # h -> 1 layer on VPU (multiply) + XLU (lane reduction); MXU stays free for the
    # next tile's big matmul and we avoid a lane-width-1 MXU result.
    v = jnp.sum(h * w2_ref[...], axis=1, keepdims=True) + b2_ref[0]   # (TILE_N, 1)
    out_ref[:, 0:1] = v
    out_ref[:, 1:2] = v * r_ref[...]


def _pick_tiling(n_tokens, h_pad):
    """Pick (tile_n, n_pad, vmem_limit_bytes) from the device's VMEM capacity."""
    vmem = _vmem_capacity_bytes()
    vmem_limit = int(min(vmem * 3 // 4, 96 * 1024 * 1024))     # 48 MiB on v7x, 96 MiB on v5e/v6e
    # Resident (single-buffered) operands: W1 bf16 + b1/w2 f32 rows.
    resident = h_pad * h_pad * 2 + 2 * h_pad * 4
    # Per token row: x double-buffered bf16 (2*2 B/lane) + f32 hidden intermediate
    # (4 B/lane), plus a few bytes for rewards/outputs.
    per_row = 8 * h_pad + 64
    avail = max(vmem_limit - resident - (2 << 20), per_row * _LANE)
    tile_cap = max(_LANE, min(2048, (avail // per_row) // _LANE * _LANE))

    n_pad128 = _round_up(max(n_tokens, 1), _LANE)
    if n_pad128 <= tile_cap:
        # Whole problem fits one tile; split in two when possible so a 2-TC chip
        # (v7x) can shard the "parallel" grid axis across both TensorCores.
        tile_n = _round_up(n_pad128 // 2, _LANE) if n_pad128 >= 2 * _LANE else _LANE
    else:
        tile_n = tile_cap
    n_pad = _round_up(n_pad128, tile_n)
    return tile_n, n_pad, vmem_limit


@jax.jit
def _value_mlp_forward_fused(x, rewards, w1, b1, w2, b2):
    """x: [N, H] activations, rewards: [N]; returns (values [N], loss [N]) in f32.

    Weights follow the [in, out] convention (x @ w1 + b1 matches torch Linear).
    All layout prep (cast/pad) happens under jit and fuses into a single copy.
    """
    n, h = x.shape
    h_pad = _round_up(h, _LANE)
    tile_n, n_pad, vmem_limit = _pick_tiling(n, h_pad)

    # bf16 streamed operands; f32 accumulation happens inside the kernel.
    x_k = jnp.pad(x.astype(jnp.bfloat16), ((0, n_pad - n), (0, h_pad - h)))
    r_k = jnp.pad(rewards.astype(jnp.float32).reshape(-1),
                  (0, n_pad - n)).reshape(n_pad, 1)
    w1_k = jnp.pad(w1.astype(jnp.bfloat16), ((0, h_pad - h), (0, h_pad - h)))
    b1_k = jnp.pad(b1.astype(jnp.float32).reshape(1, h), ((0, 0), (0, h_pad - h)))
    w2_k = jnp.pad(w2.astype(jnp.float32).reshape(1, h), ((0, 0), (0, h_pad - h)))
    b2_k = b2.astype(jnp.float32).reshape(1)

    # Whole-array VMEM operands: copied in once, single-buffered (no pipelining).
    resident_spec = pl.BlockSpec(memory_space=pltpu.MemorySpace.VMEM)

    out = pl.pallas_call(
        _fused_value_kernel,
        out_shape=jax.ShapeDtypeStruct((n_pad, 2), jnp.float32),
        grid=(n_pad // tile_n,),
        in_specs=[
            pl.BlockSpec((tile_n, h_pad), lambda i: (i, 0)),    # x tile (double-buffered)
            pl.BlockSpec((tile_n, 1), lambda i: (i, 0)),        # rewards tile
            resident_spec,                                      # W1 (resident)
            resident_spec,                                      # b1 (resident)
            resident_spec,                                      # w2 (resident)
            pl.BlockSpec(memory_space=pltpu.MemorySpace.SMEM),  # b2 scalar
        ],
        out_specs=pl.BlockSpec((tile_n, 2), lambda i: (i, 0)),
        compiler_params=pltpu.CompilerParams(
            dimension_semantics=("parallel",),   # shard token tiles across TCs on v7x
            vmem_limit_bytes=vmem_limit),
    )(x_k, r_k, w1_k, b1_k, w2_k, b2_k)
    return out[:n, 0], out[:n, 1]


# ----------------------- standalone get_loss (lane-dense) -----------------------

def _loss_kernel(r_ref, v_ref, o_ref):
    o_ref[...] = r_ref[...] * v_ref[...]


@jax.jit
def _reinforce_loss(discounted_rewards, baseline_values):
    """Elementwise discounted_rewards * baseline_values, lane-dense (rows, 128)."""
    n = discounted_rewards.shape[0]
    out_dtype = jnp.result_type(discounted_rewards.dtype, baseline_values.dtype)

    rows = _round_up(max(pl.cdiv(max(n, 1), _LANE), 1), 16)
    block_rows = min(2048, rows)                 # up to ~1 MiB f32 per block/buffer
    rows = _round_up(rows, block_rows)
    n_pad = rows * _LANE

    r = jnp.pad(discounted_rewards.astype(out_dtype).reshape(-1),
                (0, n_pad - n)).reshape(rows, _LANE)
    v = jnp.pad(baseline_values.astype(out_dtype).reshape(-1),
                (0, n_pad - n)).reshape(rows, _LANE)

    spec = pl.BlockSpec((block_rows, _LANE), lambda i: (i, 0))
    out = pl.pallas_call(
        _loss_kernel,
        out_shape=jax.ShapeDtypeStruct((rows, _LANE), out_dtype),
        grid=(rows // block_rows,),
        in_specs=[spec, spec],
        out_specs=spec,
        compiler_params=pltpu.CompilerParams(dimension_semantics=("parallel",)),
    )(r, v)
    return out.reshape(-1)[:n]


# ----------------------------- Module-level wrapper -----------------------------

class MultiAgentValueBaseline:
    """JAX/Pallas port: dict of per-agent value-MLP params.

    params_per_agent: {agent_id: (w1 [h,h] stored in->out, b1 [1,h], w2 [h,1], b2 [1,1])}
    """

    def __init__(self, params_per_agent):
        self.params = params_per_agent

    def forward_and_loss(self, rewards, states, agent_id):
        stacked = jnp.stack(states)                      # [S, B, H]
        s, b, h = stacked.shape
        x = stacked.reshape(s * b, h)                    # row-major flatten
        r = jnp.asarray(rewards).reshape(-1)
        if r.shape[0] != s * b:
            # NOTE: torch forward() never reads rewards; the fused loss column is
            # only meaningful when one reward per (step, batch) element is provided.
            r = jnp.zeros((s * b,), jnp.float32)
        w1, b1, w2, b2 = self.params[agent_id]
        return _value_mlp_forward_fused(x, r, w1, b1, w2, b2)

    def forward(self, rewards, states, agent_id):
        values, _ = self.forward_and_loss(rewards, states, agent_id)
        return values                                    # [S*B], matches torch semantics

    def get_loss(self, baseline_values, discounted_rewards):
        return _reinforce_loss(discounted_rewards, baseline_values)


# ------------------------------------ Demo ------------------------------------

def _init_agent_params(key, hidden):
    k1, k2, k3, k4 = jax.random.split(key, 4)
    w1 = jax.random.normal(k1, (hidden, hidden), jnp.float32) * 0.1
    b1 = jax.random.normal(k2, (1, hidden), jnp.float32) * 0.01
    w2 = jax.random.normal(k3, (hidden, 1), jnp.float32) * 0.1
    b2 = jax.random.normal(k4, (1, 1), jnp.float32) * 0.01
    return w1, b1, w2, b2


if __name__ == "__main__":
    seq, batch, hidden = 8, 2, 32
    key = jax.random.PRNGKey(0)
    k_params0, k_params1, k_states, k_rew = jax.random.split(key, 4)

    params = {
        "agent_0": _init_agent_params(k_params0, hidden),
        "agent_1": _init_agent_params(k_params1, hidden),
    }
    baseline = MultiAgentValueBaseline(params)

    # list of seq state tensors, each [batch, hidden]  (mirrors `states: List[Tensor]`)
    states_blob = jax.random.normal(k_states, (seq, batch, hidden), jnp.float32)
    states = [states_blob[i] for i in range(seq)]
    rewards = jax.random.normal(k_rew, (seq * batch,), jnp.float32)

    # fused forward: baseline values + loss in one kernel
    values, fused_loss = baseline.forward_and_loss(rewards, states, "agent_0")
    values = jax.block_until_ready(values)
    fused_loss = jax.block_until_ready(fused_loss)
    assert values.shape == (seq * batch,)
    assert fused_loss.shape == (seq * batch,)

    # Reference checks.  The kernel streams x / W1 in bf16 with f32 accumulation, so
    # the tight check is against a reference with the same input quantization; a
    # looser check against the pure-f32 reference bounds the bf16 error.
    w1, b1, w2, b2 = params["agent_0"]
    x = jnp.stack(states).reshape(seq * batch, hidden)
    xq = x.astype(jnp.bfloat16).astype(jnp.float32)
    w1q = w1.astype(jnp.bfloat16).astype(jnp.float32)
    ref_q = (jnp.maximum(xq @ w1q + b1, 0.0) @ w2 + b2).reshape(-1)
    ref_f32 = (jnp.maximum(x @ w1 + b1, 0.0) @ w2 + b2).reshape(-1)
    assert jnp.allclose(values, ref_q, atol=1e-3, rtol=1e-3)
    assert jnp.allclose(values, ref_f32, atol=5e-2, rtol=5e-2)
    assert jnp.allclose(fused_loss, rewards * values, atol=1e-5, rtol=1e-5)

    # forward() alone (original torch semantics: returns baseline values only)
    values2 = jax.block_until_ready(baseline.forward(rewards, states, "agent_0"))
    assert jnp.allclose(values2, values, atol=1e-6)

    # standalone get_loss path
    loss = jax.block_until_ready(baseline.get_loss(values, rewards))
    assert loss.shape == (seq * batch,)
    assert jnp.allclose(loss, rewards * values, atol=1e-6)

    print("KERNEL_OK")
</pallas_src>

<mosaic_0001>
module attributes {stable_mosaic.version = 11 : i64} {
  func.func @_fused_value_kernel(%arg0: i32, %arg1: memref<128x128xbf16, #tpu.memory_space<vmem>>, %arg2: memref<128x1xf32, #tpu.memory_space<vmem>>, %arg3: memref<128x128xbf16, #tpu.memory_space<vmem>>, %arg4: memref<1x128xf32, #tpu.memory_space<vmem>>, %arg5: memref<1x128xf32, #tpu.memory_space<vmem>>, %arg6: memref<1xf32, #tpu.memory_space<smem>>, %arg7: memref<128x2xf32, #tpu.memory_space<vmem>>) attributes {dimension_semantics = [#tpu.dimension_semantics<parallel>], iteration_bounds = array<i64: 1>, scalar_prefetch = 0 : i64, scratch_operands = 0 : i64, tpu.core_type = #tpu.core_type<tc>, window_params = [{transform_indices = @transform_0, window_bounds = array<i64: 128, 128>}, {transform_indices = @transform_1, window_bounds = array<i64: 128, 1>}, {pipeline_mode = #tpu.pipeline_mode<synchronous>, transform_indices = @transform_2, window_bounds = array<i64: 128, 128>}, {pipeline_mode = #tpu.pipeline_mode<synchronous>, transform_indices = @transform_3, window_bounds = array<i64: 1, 128>}, {pipeline_mode = #tpu.pipeline_mode<synchronous>, transform_indices = @transform_4, window_bounds = array<i64: 1, 128>}, {transform_indices = @transform_5, window_bounds = array<i64: 1>}, {transform_indices = @transform_6, window_bounds = array<i64: 128, 2>}]} {
    %c0 = arith.constant 0 : index
    %c0_0 = arith.constant 0 : index
    %0 = vector.load %arg1[%c0, %c0_0] : memref<128x128xbf16, #tpu.memory_space<vmem>>, vector<128x128xbf16>
    %c0_1 = arith.constant 0 : index
    %c0_2 = arith.constant 0 : index
    %1 = vector.load %arg3[%c0_1, %c0_2] : memref<128x128xbf16, #tpu.memory_space<vmem>>, vector<128x128xbf16>
    %cst = arith.constant dense<0.000000e+00> : vector<128x128xf32>
    %2 = tpu.matmul %0, %1, %cst {dimension_numbers = #tpu.dot_dimension_numbers<[1], [0], [0], [1], [0, 0, 1, 1], [], []>} : vector<128x128xbf16>, vector<128x128xbf16>, vector<128x128xf32> -> vector<128x128xf32>
    %c0_3 = arith.constant 0 : index
    %c0_4 = arith.constant 0 : index
    %3 = vector.load %arg4[%c0_3, %c0_4] : memref<1x128xf32, #tpu.memory_space<vmem>>, vector<1x128xf32>
    %4 = vector.broadcast %3 : vector<1x128xf32> to vector<128x128xf32>
    %5 = arith.addf %2, %4 : vector<128x128xf32>
    %cst_5 = arith.constant 0.000000e+00 : f32
    %6 = vector.broadcast %cst_5 : f32 to vector<128x128xf32>
    %7 = arith.maximumf %5, %6 : vector<128x128xf32>
    %c0_6 = arith.constant 0 : index
    %c0_7 = arith.constant 0 : index
    %8 = vector.load %arg5[%c0_6, %c0_7] : memref<1x128xf32, #tpu.memory_space<vmem>>, vector<1x128xf32>
    %9 = vector.broadcast %8 : vector<1x128xf32> to vector<128x128xf32>
    %10 = arith.mulf %7, %9 : vector<128x128xf32>
    %cst_8 = arith.constant dense<0.000000e+00> : vector<128xf32>
    %11 = vector.multi_reduction <add>, %10, %cst_8 [1] : vector<128x128xf32> to vector<128xf32>
    %12 = vector.shape_cast %11 : vector<128xf32> to vector<128x1xf32>
    %c0_9 = arith.constant 0 : index
    %13 = memref.load %arg6[%c0_9] : memref<1xf32, #tpu.memory_space<smem>>
    %14 = vector.broadcast %13 : f32 to vector<128x1xf32>
    %15 = arith.addf %12, %14 : vector<128x1xf32>
    %c0_10 = arith.constant 0 : index
    %c0_11 = arith.constant 0 : index
    %16 = vector.load %arg7[%c0_10, %c0_11] : memref<128x2xf32, #tpu.memory_space<vmem>>, vector<128x1xf32>
    tpu.vector_store %arg7[%c0_10, %c0_11], %15 {strides = array<i32>} : memref<128x2xf32, #tpu.memory_space<vmem>>, vector<128x1xf32>,
    %c0_12 = arith.constant 0 : index
    %c0_13 = arith.constant 0 : index
    %17 = vector.load %arg2[%c0_12, %c0_13] : memref<128x1xf32, #tpu.memory_space<vmem>>, vector<128x1xf32>
    %18 = arith.mulf %15, %17 : vector<128x1xf32>
    %c0_14 = arith.constant 0 : index
    %c1 = arith.constant 1 : index
    %19 = vector.load %arg7[%c0_14, %c1] : memref<128x2xf32, #tpu.memory_space<vmem>>, vector<128x1xf32>
    tpu.vector_store %arg7[%c0_14, %c1], %18 {strides = array<i32>} : memref<128x2xf32, #tpu.memory_space<vmem>>, vector<128x1xf32>,
    return
  }
  func.func @transform_0(%arg0: i32) -> (i32, i32) {
    %c0_i32 = arith.constant 0 : i32
    %c0_i32_0 = arith.constant 0 : i32
    return %arg0, %c0_i32 : i32, i32
  }
  func.func @transform_1(%arg0: i32) -> (i32, i32) {
    %c0_i32 = arith.constant 0 : i32
    %c0_i32_0 = arith.constant 0 : i32
    return %arg0, %c0_i32 : i32, i32
  }
  func.func @transform_2(%arg0: i32) -> (i32, i32) {
    %c0_i32 = arith.constant 0 : i32
    %c0_i32_0 = arith.constant 0 : i32
    %c0_i32_1 = arith.constant 0 : i32
    return %c0_i32, %c0_i32_0 : i32, i32
  }
  func.func @transform_3(%arg0: i32) -> (i32, i32) {
    %c0_i32 = arith.constant 0 : i32
    %c0_i32_0 = arith.constant 0 : i32
    %c0_i32_1 = arith.constant 0 : i32
    return %c0_i32, %c0_i32_0 : i32, i32
  }
  func.func @transform_4(%arg0: i32) -> (i32, i32) {
    %c0_i32 = arith.constant 0 : i32
    %c0_i32_0 = arith.constant 0 : i32
    %c0_i32_1 = arith.constant 0 : i32
    return %c0_i32, %c0_i32_0 : i32, i32
  }
  func.func @transform_5(%arg0: i32) -> i32 {
    %c0_i32 = arith.constant 0 : i32
    %c0_i32_0 = arith.constant 0 : i32
    return %c0_i32 : i32
  }
  func.func @transform_6(%arg0: i32) -> (i32, i32) {
    %c0_i32 = arith.constant 0 : i32
    %c0_i32_0 = arith.constant 0 : i32
    return %arg0, %c0_i32 : i32, i32
  }
}

</mosaic_0001>

<bundles_post_ra>
// kernel: _value_mlp_forward_fused.1
= control target key start
LH: loop header
LB: loop body
LE: loop exit
PB: predicated region body
PF: predicated region fallthrough
CT: control target
= control target key end

     0   :  { %vm346_vm0 = vcmask 7168   ;;  %s579_s18 = smov 1   ;;  %vm459_vm1 = vcmask 15368   ;;  %s918_s2 = inlined_call_operand.vmem [shape: bf16[128,128], index: 2, kind: input, shape index: {}]   ;;  %s919_s0 = inlined_call_operand.vmem [shape: bf16[128,128], index: 0, kind: input, shape index: {}]   ;;  %s920_s3 = inlined_call_operand.vmem [shape: f32[1,128], index: 3, kind: input, shape index: {}]   ;;  %s921_s4 = inlined_call_operand.vmem [shape: f32[1,128], index: 4, kind: input, shape index: {}]   ;;  %s922_s5 = inlined_call_operand.<no memory space> [shape: f32[1], index: 5, kind: input, shape index: {}]   ;;  %s923_s1 = inlined_call_operand.vmem [shape: f32[128,1], index: 1, kind: input, shape index: {}]   ;;  %s924_s6 = inlined_call_operand.vmem [shape: f32[128,2], index: 6, kind: output, shape index: {}]  }
   0x1   :  { %v563_v0 = vld [vmem:[%s918_s2] sm:$0xff]   ;;  %v564_v1 = vld [vmem:[%s918_s2 + $0x8] sm:$0xff]   ;;  %v565_v2 = vld [vmem:[%s918_s2 + $0x10] sm:$0xff]  }
   0x2   :  { %514 = vmatprep.subr.bf16.mxu0 %v563_v0  ;;  %546 = vmatprep.subr.bf16.mxu1 %v563_v0  ;;  %v566_v3 = vld [vmem:[%s918_s2 + $0x18] sm:$0xff]   ;;  %v571_v4 = vld [vmem:[%s919_s0] sm:$0xff]   ;;  %v568_v7 = vld [vmem:[%s918_s2 + $0x28] sm:$0xff]  }
   0x3   :  { %515 = vmatpush3.bf16.msra.mxu0 %v563_v0  ;;  %554 = vmatpush3.bf16.msra.mxu1 %v563_v0  ;;  %v572_v5 = vld [vmem:[%s919_s0 + $0x20] sm:$0xff]   ;;  %v569_v8 = vld [vmem:[%s918_s2 + $0x30] sm:$0xff]   ;;  %v570_v9 = vld [vmem:[%s918_s2 + $0x38] sm:$0xff]  }
   0x4   :  { %516 = vmatprep.subr.bf16.mxu0 %v564_v1  ;;  %547 = vmatprep.subr.bf16.mxu1 %v564_v1  ;;  %v567_v6 = vld [vmem:[%s918_s2 + $0x20] sm:$0xff]   ;;  %v573_v10 = vld [vmem:[%s919_s0 + $0x8] sm:$0xff]   ;;  %v575_v12 = vld [vmem:[%s919_s0 + $0x10] sm:$0xff]  }
   0x5   :  { %530 = vmatprep.mubr.bf16.mxu0 %v571_v4  ;;  %538 = vmatprep.mubr.bf16.mxu1 %v572_v5  ;;  %v574_v11 = vld [vmem:[%s919_s0 + $0x28] sm:$0xff]   ;;  %v577_v13 = vld [vmem:[%s919_s0 + $0x30] sm:$0xff]   ;;  %v576_v14 = vld [vmem:[%s919_s0 + $0x18] sm:$0xff]  }
   0x6   :  { %v578_v15 = vld [vmem:[%s919_s0 + $0x38] sm:$0xff]   ;;  %v666_v16 = vld [vmem:[%s920_s3] ss:$0 sm:$0xff] }
   0x7   :  { %517 = vmatpush3.bf16.msra.mxu0 %v564_v1  ;;  %555 = vmatpush3.bf16.msra.mxu1 %v564_v1  ;;  %v674_v26 = vld [vmem:[%s921_s4] ss:$0 sm:$0xff] }
   0x8   :  { %518 = vmatprep.subr.bf16.mxu0 %v565_v2  ;;  %548 = vmatprep.subr.bf16.mxu1 %v565_v2 }
   0xb   :  { %519 = vmatpush3.bf16.msra.mxu0 %v565_v2  ;;  %556 = vmatpush3.bf16.msra.mxu1 %v565_v2 }
   0xc   :  { %520 = vmatprep.subr.bf16.mxu0 %v566_v3  ;;  %549 = vmatprep.subr.bf16.mxu1 %v566_v3 }
   0xf   :  { %521 = vmatpush3.bf16.msra.mxu0 %v566_v3  ;;  %557 = vmatpush3.bf16.msra.mxu1 %v566_v3 }
  0x10   :  { %522 = vmatprep.subr.bf16.mxu0 %v567_v6  ;;  %550 = vmatprep.subr.bf16.mxu1 %v567_v6 }
  0x13   :  { %523 = vmatpush3.bf16.msra.mxu0 %v567_v6  ;;  %558 = vmatpush3.bf16.msra.mxu1 %v567_v6 }
  0x14   :  { %524 = vmatprep.subr.bf16.mxu0 %v568_v7  ;;  %551 = vmatprep.subr.bf16.mxu1 %v568_v7 }
  0x17   :  { %525 = vmatpush3.bf16.msra.mxu0 %v568_v7  ;;  %559 = vmatpush3.bf16.msra.mxu1 %v568_v7 }
  0x18   :  { %526 = vmatprep.subr.bf16.mxu0 %v569_v8  ;;  %552 = vmatprep.subr.bf16.mxu1 %v569_v8 }
  0x1b   :  { %527 = vmatpush3.bf16.msra.mxu0 %v569_v8  ;;  %560 = vmatpush3.bf16.msra.mxu1 %v569_v8 }
  0x1c   :  { %528 = vmatprep.subr.bf16.mxu0 %v570_v9  ;;  %553 = vmatprep.subr.bf16.mxu1 %v570_v9 }
  0x1f   :  { %529 = vmatpush3.bf16.msra.mxu0 %v570_v9  ;;  %561 = vmatpush3.bf16.msra.mxu1 %v570_v9 }
  0x22   :  { %531 = vmatmul.mubr.bf16.vlgmr.msra.gmra.mrb[0].mxu0 %v573_v10  ;;  %539 = vmatmul.mubr.bf16.vlgmr.msra.gmra.mrb[0].mxu1 %v574_v11 }
  0x23   :  { %534 = vmatprep.mubr.bf16.mxu0 %v575_v12  ;;  %542 = vmatprep.mubr.bf16.mxu1 %v577_v13 }
  0x2a   :  { %535 = vmatmul.mubr.bf16.gmra.mrb[4].mxu0 %v576_v14  ;;  %543 = vmatmul.mubr.bf16.gmra.mrb[4].mxu1 %v578_v15 }
  0xf5   :  { %v532_v17 = vpop.f32.mrb[0].mxu0  ;;  %v540_v18 = vpop.f32.mrb[0].mxu1 }
  0xf6   :  { %v203_v19 = vadd.f32 %v532_v17, %v666_v16  ;;  %v235_v20 = vadd.f32 %v540_v18, %v666_v16  ;;  %v194_v21 = vpop.f32.mrb[1].mxu0  ;;  %v226_v22 = vpop.f32.mrb[1].mxu1 }
  0xf7   :  { %v195_v23 = vadd.f32 %v666_v16, %v194_v21  ;;  %v533_v24 = vpop.f32.mrb[2].mxu0  ;;  %v541_v25 = vpop.f32.mrb[2].mxu1  ;;  %v227_v32 = vadd.f32 %v666_v16, %v226_v22  ;;  %v365_v21 = vld [vmem:[%s923_s1 + $0x10] sm:$0xff] }
  0xf8   :  { %v259_v27 = vmax.f32 %v203_v19, 0.0  ;;  %v267_v28 = vmax.f32 %v235_v20, 0.0  ;;  %v206_v29 = vadd.f32 %v533_v24, %v666_v16  ;;  %v197_v30 = vpop.f32.mrb[3].mxu0  ;;  %v229_v31 = vpop.f32.mrb[3].mxu1  ;;  %v238_v33 = vadd.f32 %v541_v25, %v666_v16  ;;  %v373_v19 = vld [vmem:[%s923_s1 + $0x50] sm:$0xff] }
  0xf9   :  { %v257_v34 = vmax.f32 %v195_v23, 0.0  ;;  %v265_v38 = vmax.f32 %v227_v32, 0.0  ;;  %v198_v39 = vadd.f32 %v666_v16, %v197_v30  ;;  %v230_v43 = vadd.f32 %v666_v16, %v229_v31 }
  0xfa   :  { %v260_v35 = vmax.f32 %v206_v29, 0.0  ;;  %v290_v36 = vmul.f32 %v674_v26, %v267_v28  ;;  %v282_v37 = vmul.f32 %v674_v26, %v259_v27  ;;  %v268_v42 = vmax.f32 %v238_v33, 0.0  ;;  %v366_v27 = vld [vmem:[%s923_s1 + $0x18] sm:$0xff]  ;;  %v363_v29 = vld [vmem:[%s923_s1] sm:$0xff] }
  0xfb   :  { %v280_v45 = vmul.f32 %v674_v26, %v257_v34  ;;  %v258_v54 = vmax.f32 %v198_v39, 0.0  ;;  %v266_v55 = vmax.f32 %v230_v43, 0.0  ;;  %v288_v57 = vmul.f32 %v674_v26, %v265_v38 }
  0xfc   :  { %316 = vadd.xlane.f32.xlu0 %v290_v36  ;;  %300 = vadd.xlane.f32.xlu1 %v282_v37  ;;  %v283_v44 = vmul.f32 %v674_v26, %v260_v35  ;;  %v291_v56 = vmul.f32 %v674_v26, %v268_v42  ;;  %v374_v35 = vld [vmem:[%s923_s1 + $0x58] sm:$0xff]  ;;  %v371_v37 = vld [vmem:[%s923_s1 + $0x40] sm:$0xff] }
  0xfd   :  { %v536_v40 = vpop.f32.mrb[4].mxu0  ;;  %v544_v41 = vpop.f32.mrb[4].mxu1  ;;  %v289_v62 = vmul.f32 %v674_v26, %v266_v55  ;;  %v281_v63 = vmul.f32 %v674_v26, %v258_v54 }
  0xfe   :  { %v210_v46 = vpop.f32.mrb[5].mxu0  ;;  %v242_v47 = vpop.f32.mrb[5].mxu1  ;;  %v219_v50 = vadd.f32 %v536_v40, %v666_v16  ;;  %v251_v8 = vadd.f32 %v544_v41, %v666_v16 }
  0xff   :  { %v537_v48 = vpop.f32.mrb[6].mxu0  ;;  %v545_v49 = vpop.f32.mrb[6].mxu1  ;;  %v211_v60 = vadd.f32 %v666_v16, %v210_v46  ;;  %v243_v0 = vadd.f32 %v666_v16, %v242_v47 }
 0x100   :  { %302 = vadd.xlane.f32.xlu1 %v283_v44  ;;  %296 = vadd.xlane.f32.xlu0 %v280_v45  ;;  %v222_v51 = vadd.f32 %v537_v48, %v666_v16  ;;  %v213_v52 = vpop.f32.mrb[7].mxu0  ;;  %v245_v53 = vpop.f32.mrb[7].mxu1  ;;  %v263_v58 = vmax.f32 %v219_v50, 0.0  ;;  %v254_v9 = vadd.f32 %v545_v49, %v666_v16  ;;  %v271_v14 = vmax.f32 %v251_v8, 0.0  ;;  %v364_v44 = vld [vmem:[%s923_s1 + $0x8] sm:$0xff] }
 0x101   :  { %v214_v61 = vadd.f32 %v666_v16, %v213_v52  ;;  %v246_v3 = vadd.f32 %v666_v16, %v245_v53  ;;  %v261_v4 = vmax.f32 %v211_v60, 0.0  ;;  %v269_v6 = vmax.f32 %v243_v0, 0.0  ;;  %v372_v49 = vld [vmem:[%s923_s1 + $0x48] sm:$0xff] }
 0x102   :  { %v264_v59 = vmax.f32 %v222_v51, 0.0  ;;  %v286_v2 = vmul.f32 %v674_v26, %v263_v58  ;;  %v272_v15 = vmax.f32 %v254_v9, 0.0  ;;  %v294_v18 = vmul.f32 %v674_v26, %v271_v14  ;;  %v369_v51 = vld [vmem:[%s923_s1 + $0x30] sm:$0xff]  ;;  %v376_v9 = vld [vmem:[%s923_s1 + $0x68] sm:$0xff] }
 0x103   :  { %v262_v5 = vmax.f32 %v214_v61, 0.0  ;;  %v270_v7 = vmax.f32 %v246_v3, 0.0  ;;  %v284_v11 = vmul.f32 %v674_v26, %v261_v4  ;;  %v292_v13 = vmul.f32 %v674_v26, %v269_v6  ;;  %v375_v3 = vld [vmem:[%s923_s1 + $0x60] sm:$0xff] }
 0x104   :  { %318 = vadd.xlane.f32.xlu1 %v291_v56  ;;  %312 = vadd.xlane.f32.xlu0 %v288_v57  ;;  %v287_v1 = vmul.f32 %v674_v26, %v264_v59  ;;  %v295_v17 = vmul.f32 %v674_v26, %v272_v15  ;;  %v708_v16 = vstv %s922_s5  ;;  %v370_v57 = vld [vmem:[%s923_s1 + $0x38] sm:$0xff]  ;;  %v367_v59 = vld [vmem:[%s923_s1 + $0x20] sm:$0xff] }
 0x105   :  { %v285_v10 = vmul.f32 %v674_v26, %v262_v5  ;;  %v293_v12 = vmul.f32 %v674_v26, %v270_v7 }
 0x108   :  { %314 = vadd.xlane.f32.xlu1 %v289_v62  ;;  %298 = vadd.xlane.f32.xlu0 %v281_v63 }
 0x10c   :  { %310 = vadd.xlane.f32.xlu1 %v287_v1  ;;  %308 = vadd.xlane.f32.xlu0 %v286_v2  ;;  %v368_v1 = vld [vmem:[%s923_s1 + $0x28] sm:$0xff] }
 0x110   :  { %306 = vadd.xlane.f32.xlu1 %v285_v10  ;;  %304 = vadd.xlane.f32.xlu0 %v284_v11  ;;  %v377_v11 = vld [vmem:[%s923_s1 + $0x70] sm:$0xff] }
 0x114   :  { %322 = vadd.xlane.f32.xlu1 %v293_v12  ;;  %320 = vadd.xlane.f32.xlu0 %v292_v13 }
 0x118   :  { %326 = vadd.xlane.f32.xlu1 %v295_v17  ;;  %324 = vadd.xlane.f32.xlu0 %v294_v18  ;;  %v378_v18 = vld [vmem:[%s923_s1 + $0x78] sm:$0xff] }
 0x189   :  { %v317_v20 = vpop.xlane.xlu0 %316  ;;  %v301_v22 = vpop.xlane.xlu1 %300 }
 0x18a   :  { %v340_v23 = vadd.f32 %v708_v16, %v317_v20  ;;  %v332_v24 = vadd.f32 %v708_v16, %v301_v22 }
 0x18c   :  { %357 = vst.msk [vmem:[%s924_s6 + $0x50] sm:$0xff] %vm346_vm0, %v340_v23  ;;  %v389_v25 = vmul.f32 %v373_v19, %v340_v23  ;;  %349 = vst.msk [vmem:[%s924_s6 + $0x10] sm:$0xff] %vm346_vm0, %v332_v24  ;;  %v381_v26 = vmul.f32 %v365_v21, %v332_v24 }
 0x18d   :  { %v303_v28 = vpop.xlane.xlu1 %302  ;;  %v297_v30 = vpop.xlane.xlu0 %296 }
 0x18e   :  { %v333_v31 = vadd.f32 %v708_v16, %v303_v28  ;;  %v330_v32 = vadd.f32 %v708_v16, %v297_v30  ;;  %415 = vrot.lane.b32.xlu1 %v381_v26, %s579_s18  ;;  %431 = vrot.lane.b32.xlu0 %v389_v25, %s579_s18 }
 0x190   :  { %350 = vst.msk [vmem:[%s924_s6 + $0x18] sm:$0xff] %vm346_vm0, %v333_v31  ;;  %v382_v33 = vmul.f32 %v366_v27, %v333_v31  ;;  %347 = vst.msk [vmem:[%s924_s6] sm:$0xff] %vm346_vm0, %v330_v32  ;;  %v379_v34 = vmul.f32 %v363_v29, %v330_v32 }
 0x191   :  { %v319_v36 = vpop.xlane.xlu1 %318  ;;  %v313_v38 = vpop.xlane.xlu0 %312 }
 0x192   :  { %v341_v39 = vadd.f32 %v708_v16, %v319_v36  ;;  %v338_v40 = vadd.f32 %v708_v16, %v313_v38  ;;  %417 = vrot.lane.b32.xlu1 %v382_v33, %s579_s18  ;;  %411 = vrot.lane.b32.xlu0 %v379_v34, %s579_s18 }
 0x194   :  { %358 = vst.msk [vmem:[%s924_s6 + $0x58] sm:$0xff] %vm346_vm0, %v341_v39  ;;  %v390_v41 = vmul.f32 %v374_v35, %v341_v39  ;;  %355 = vst.msk [vmem:[%s924_s6 + $0x40] sm:$0xff] %vm346_vm0, %v338_v40  ;;  %v387_v42 = vmul.f32 %v371_v37, %v338_v40 }
 0x195   :  { %v315_v43 = vpop.xlane.xlu1 %314  ;;  %v299_v45 = vpop.xlane.xlu0 %298 }
 0x196   :  { %v339_v46 = vadd.f32 %v708_v16, %v315_v43  ;;  %v331_v47 = vadd.f32 %v708_v16, %v299_v45  ;;  %433 = vrot.lane.b32.xlu1 %v390_v41, %s579_s18  ;;  %427 = vrot.lane.b32.xlu0 %v387_v42, %s579_s18 }
 0x198   :  { %356 = vst.msk [vmem:[%s924_s6 + $0x48] sm:$0xff] %vm346_vm0, %v339_v46  ;;  %348 = vst.msk [vmem:[%s924_s6 + $0x8] sm:$0xff] %vm346_vm0, %v331_v47  ;;  %v380_v48 = vmul.f32 %v364_v44, %v331_v47  ;;  %v388_v55 = vmul.f32 %v372_v49, %v339_v46 }
 0x199   :  { %v311_v50 = vpop.xlane.xlu1 %310  ;;  %v309_v52 = vpop.xlane.xlu0 %308 }
 0x19a   :  { %v337_v53 = vadd.f32 %v708_v16, %v311_v50  ;;  %v336_v54 = vadd.f32 %v708_v16, %v309_v52  ;;  %413 = vrot.lane.b32.xlu1 %v380_v48, %s579_s18 }
 0x19c   :  { %354 = vst.msk [vmem:[%s924_s6 + $0x38] sm:$0xff] %vm346_vm0, %v337_v53  ;;  %353 = vst.msk [vmem:[%s924_s6 + $0x30] sm:$0xff] %vm346_vm0, %v336_v54  ;;  %v385_v56 = vmul.f32 %v369_v51, %v336_v54  ;;  %v386_v63 = vmul.f32 %v370_v57, %v337_v53 }
 0x19d   :  { %v307_v58 = vpop.xlane.xlu1 %306  ;;  %v305_v60 = vpop.xlane.xlu0 %304 }
 0x19e   :  { %v335_v61 = vadd.f32 %v708_v16, %v307_v58  ;;  %v334_v62 = vadd.f32 %v708_v16, %v305_v60  ;;  %429 = vrot.lane.b32.xlu1 %v388_v55, %s579_s18  ;;  %423 = vrot.lane.b32.xlu0 %v385_v56, %s579_s18 }
 0x1a0   :  { %352 = vst.msk [vmem:[%s924_s6 + $0x28] sm:$0xff] %vm346_vm0, %v335_v61  ;;  %351 = vst.msk [vmem:[%s924_s6 + $0x20] sm:$0xff] %vm346_vm0, %v334_v62  ;;  %v383_v0 = vmul.f32 %v367_v59, %v334_v62  ;;  %v384_v7 = vmul.f32 %v368_v1, %v335_v61 }
 0x1a1   :  { %v323_v2 = vpop.xlane.xlu1 %322  ;;  %v321_v4 = vpop.xlane.xlu0 %320 }
 0x1a2   :  { %v343_v5 = vadd.f32 %v708_v16, %v323_v2  ;;  %v342_v6 = vadd.f32 %v708_v16, %v321_v4  ;;  %425 = vrot.lane.b32.xlu1 %v386_v63, %s579_s18  ;;  %419 = vrot.lane.b32.xlu0 %v383_v0, %s579_s18 }
 0x1a4   :  { %360 = vst.msk [vmem:[%s924_s6 + $0x68] sm:$0xff] %vm346_vm0, %v343_v5  ;;  %359 = vst.msk [vmem:[%s924_s6 + $0x60] sm:$0xff] %vm346_vm0, %v342_v6  ;;  %v391_v8 = vmul.f32 %v375_v3, %v342_v6  ;;  %v392_v15 = vmul.f32 %v376_v9, %v343_v5 }
 0x1a5   :  { %v327_v10 = vpop.xlane.xlu1 %326  ;;  %v325_v12 = vpop.xlane.xlu0 %324 }
 0x1a6   :  { %v345_v13 = vadd.f32 %v708_v16, %v327_v10  ;;  %v344_v14 = vadd.f32 %v708_v16, %v325_v12  ;;  %421 = vrot.lane.b32.xlu1 %v384_v7, %s579_s18  ;;  %435 = vrot.lane.b32.xlu0 %v391_v8, %s579_s18 }
 0x1a8   :  { %362 = vst.msk [vmem:[%s924_s6 + $0x78] sm:$0xff] %vm346_vm0, %v345_v13  ;;  %361 = vst.msk [vmem:[%s924_s6 + $0x70] sm:$0xff] %vm346_vm0, %v344_v14  ;;  %v393_v17 = vmul.f32 %v377_v11, %v344_v14  ;;  %v394_v16 = vmul.f32 %v378_v18, %v345_v13 }
 0x1aa   :  { %437 = vrot.lane.b32.xlu1 %v392_v15, %s579_s18  ;;  %439 = vrot.lane.b32.xlu0 %v393_v17, %s579_s18 }
 0x1ae   :  { %441 = vrot.lane.b32.xlu1 %v394_v16, %s579_s18 }
 0x200   :  { %v416_v19 = vpop.permute.xlu1 %415  ;;  %v432_v20 = vpop.permute.xlu0 %431 }
 0x201   :  { %462 = vst.msk [vmem:[%s924_s6 + $0x10] sm:$0xff] %vm459_vm1, %v416_v19  ;;  %470 = vst.msk [vmem:[%s924_s6 + $0x50] sm:$0xff] %vm459_vm1, %v432_v20 }
 0x204   :  { %v418_v21 = vpop.permute.xlu1 %417  ;;  %v412_v22 = vpop.permute.xlu0 %411 }
 0x205   :  { %463 = vst.msk [vmem:[%s924_s6 + $0x18] sm:$0xff] %vm459_vm1, %v418_v21  ;;  %460 = vst.msk [vmem:[%s924_s6] sm:$0xff] %vm459_vm1, %v412_v22 }
 0x208   :  { %v434_v23 = vpop.permute.xlu1 %433  ;;  %v428_v24 = vpop.permute.xlu0 %427 }
 0x209   :  { %471 = vst.msk [vmem:[%s924_s6 + $0x58] sm:$0xff] %vm459_vm1, %v434_v23  ;;  %468 = vst.msk [vmem:[%s924_s6 + $0x40] sm:$0xff] %vm459_vm1, %v428_v24 }
 0x20c   :  { %v414_v25 = vpop.permute.xlu1 %413 }
 0x20d   :  { %461 = vst.msk [vmem:[%s924_s6 + $0x8] sm:$0xff] %vm459_vm1, %v414_v25 }
 0x210   :  { %v430_v26 = vpop.permute.xlu1 %429  ;;  %v424_v27 = vpop.permute.xlu0 %423 }
 0x211   :  { %469 = vst.msk [vmem:[%s924_s6 + $0x48] sm:$0xff] %vm459_vm1, %v430_v26  ;;  %466 = vst.msk [vmem:[%s924_s6 + $0x30] sm:$0xff] %vm459_vm1, %v424_v27 }
 0x214   :  { %v426_v28 = vpop.permute.xlu1 %425  ;;  %v420_v29 = vpop.permute.xlu0 %419 }
 0x215   :  { %467 = vst.msk [vmem:[%s924_s6 + $0x38] sm:$0xff] %vm459_vm1, %v426_v28  ;;  %464 = vst.msk [vmem:[%s924_s6 + $0x20] sm:$0xff] %vm459_vm1, %v420_v29 }
 0x218   :  { %v422_v30 = vpop.permute.xlu1 %421  ;;  %v436_v31 = vpop.permute.xlu0 %435 }
 0x219   :  { %465 = vst.msk [vmem:[%s924_s6 + $0x28] sm:$0xff] %vm459_vm1, %v422_v30  ;;  %472 = vst.msk [vmem:[%s924_s6 + $0x60] sm:$0xff] %vm459_vm1, %v436_v31 }
 0x21c   :  { %v438_v32 = vpop.permute.xlu1 %437  ;;  %v440_v33 = vpop.permute.xlu0 %439 }
 0x21d   :  { %473 = vst.msk [vmem:[%s924_s6 + $0x68] sm:$0xff] %vm459_vm1, %v438_v32  ;;  %474 = vst.msk [vmem:[%s924_s6 + $0x70] sm:$0xff] %vm459_vm1, %v440_v33 }
 0x220   :  { %v442_v34 = vpop.permute.xlu1 %441 }
 0x221   :  { %475 = vst.msk [vmem:[%s924_s6 + $0x78] sm:$0xff] %vm459_vm1, %v442_v34 }

</bundles_post_ra>
